<compile_context>
chip_gen: v6e
topology: v6e:2x2x1
jax: 0.10.0
libtpu: 0.0.40
codegen_flags: <defaults>
</compile_context>

<pallas_src>
import functools
import math

import jax
import jax.numpy as jnp
from jax import lax
from jax.experimental import pallas as pl
from jax.experimental.pallas import tpu as pltpu

_MAX_LANES = 8192   # lane-width cap per grid step (amortizes per-step overhead)


# --------------------------------------------------------------------------
# Kernel
# --------------------------------------------------------------------------
def _conv1d_k3(h, w_ref, b_ref, not_first, not_last, use_mxu):
    """k=3 'same'-padded conv of a (C, N) f32 slab (N spans whole sequences)."""
    f32 = jnp.float32
    n = h.shape[-1]
    # Neighbor columns via XLU roll; zero the wrapped column at every sequence
    # boundary (masks are 1.0 except at sequence starts / ends).
    h_prev = pltpu.roll(h, shift=1, axis=1) * not_first      # h[:, j-1]
    h_next = pltpu.roll(h, shift=n - 1, axis=1) * not_last   # h[:, j+1]
    if use_mxu:
        # Three accumulated MXU dots with bf16 operands, f32 accumulation.
        # No (3C, N) concat slab is materialized.
        out = jnp.dot(w_ref[1], h.astype(jnp.bfloat16),
                      preferred_element_type=f32)
        out = out + jnp.dot(w_ref[0], h_prev.astype(jnp.bfloat16),
                            preferred_element_type=f32)
        out = out + jnp.dot(w_ref[2], h_next.astype(jnp.bfloat16),
                            preferred_element_type=f32)
    else:
        # Tiny C_in: a K<8 matmul wastes the MXU; do 3*C_in VPU outer-product
        # FMAs ((H,1) weight column x (1,N) activation row) in f32 instead.
        w = w_ref[...]                                        # (3, H, C) f32
        c_in = w.shape[2]
        taps = (h_prev, h, h_next)
        out = jnp.zeros((w.shape[1], n), f32)
        for k in range(3):
            for c in range(c_in):
                out = out + w[k, :, c:c + 1] * taps[k][c:c + 1, :]
    return out + b_ref[...]


def _conv_encoder_kernel(x_ref, nf_ref, nl_ref,
                         w1_ref, b1_ref, w2_ref, b2_ref, o_ref,
                         *, mxu1, mxu2):
    """x_ref: (C_in, N); nf/nl: (1, N) keep-masks; o_ref: (H, N)."""
    nf = nf_ref[...]
    nl = nl_ref[...]
    h = x_ref[...].astype(jnp.float32)
    h = _conv1d_k3(h, w1_ref, b1_ref, nf, nl, mxu1)
    h = _conv1d_k3(h, w2_ref, b2_ref, nf, nl, mxu2)
    o_ref[...] = h.astype(o_ref.dtype)


# --------------------------------------------------------------------------
# Planning helpers (all plain-Python, trace-time)
# --------------------------------------------------------------------------
def _prep_weight(w, use_mxu):
    """(C_out, C_in, 3) -> tap-major (3, C_out, C_in); bf16 for the MXU path."""
    c_out, c_in, k = w.shape
    assert k == 3
    w_t = jnp.transpose(w, (2, 0, 1))
    return w_t.astype(jnp.bfloat16) if use_mxu else w_t.astype(jnp.float32)


def _const_spec(shape):
    nd = len(shape)
    return pl.BlockSpec(shape, lambda *_: (0,) * nd)


def _vmem_capacity_bytes():
    try:
        info = pltpu.get_tpu_info()
        for name in ("vmem_capacity_bytes", "vmem_size_bytes", "vmem_bytes"):
            v = getattr(info, name, None)
            if v:
                return int(v)
    except Exception:
        pass
    return 64 << 20   # conservative (v7x per-core VMEM)


def _vmem_estimate(n_lanes, c_in, h, x_bytes, o_bytes, const_bytes):
    """Rough VMEM footprint for one grid step with n_lanes lanes."""
    n = n_lanes
    io = 2 * n * (c_in * x_bytes + h * o_bytes)          # double-buffered blocks
    masks = 2 * 2 * n * 4                                 # two (1,N) f32 masks
    cmax = max(c_in, h)
    temps = (3 * cmax + 2 * h) * n * 4 + 3 * cmax * n * 2  # f32 taps/acc + bf16
    return io + masks + temps + 2 * const_bytes            # consts double-buffered


def _plan_folded(b, l, fits):
    """Batches per block (blocks hold whole sequences) and padded batch count."""
    bt0 = 128 // math.gcd(l, 128)        # min batches/block for lane-dense stores
    bt_cap = bt0 * pl.cdiv(b, bt0)       # never exceed the (padded) batch
    if fits(bt0 * l):
        bt = bt0
        while 2 * bt <= bt_cap and 2 * bt * l <= _MAX_LANES and fits(2 * bt * l):
            bt *= 2
        # Prefer >=4 grid steps (v7x: 2 cores x double-buffer) but keep blocks
        # >=1024 lanes so v5e/v6e don't pay per-step overhead for nothing.
        while pl.cdiv(b, bt) < 4 and bt // 2 >= bt0 and (bt // 2) * l >= 1024:
            bt //= 2
    else:
        # TODO(synk): lane-dense minimum block exceeds the VMEM budget; fall
        # back to whole-sequence blocks with masked stores.
        bt = 1
        while 2 * bt <= b and fits(2 * bt * l):
            bt *= 2
    return bt, pl.cdiv(b, bt) * bt


# --------------------------------------------------------------------------
# Wrapper
# --------------------------------------------------------------------------
@jax.jit
def conv_encoder(x, w1, b1, w2, b2):
    """x: (B, C_in, L); w1: (H, C_in, 3); b1: (H,); w2: (H, H, 3); b2: (H,)."""
    B, C_in, L = x.shape
    H = w1.shape[0]
    out_dtype = x.dtype
    x_bytes = jnp.dtype(x.dtype).itemsize
    o_bytes = jnp.dtype(out_dtype).itemsize

    mxu1 = C_in >= 8
    mxu2 = H >= 8
    w1_p = _prep_weight(w1, mxu1)
    w2_p = _prep_weight(w2, mxu2)
    b1_c = b1.reshape(H, 1).astype(jnp.float32)
    b2_c = b2.reshape(H, 1).astype(jnp.float32)
    const_bytes = (w1_p.size * jnp.dtype(w1_p.dtype).itemsize
                   + w2_p.size * jnp.dtype(w2_p.dtype).itemsize
                   + (b1_c.size + b2_c.size) * 4)

    cap = _vmem_capacity_bytes()
    budget = int(cap * 0.6)
    fits = lambda n: _vmem_estimate(n, C_in, H, x_bytes, o_bytes,
                                    const_bytes) <= budget

    kernel = functools.partial(_conv_encoder_kernel, mxu1=mxu1, mxu2=mxu2)
    cparams = pltpu.CompilerParams(
        dimension_semantics=("parallel",),
        vmem_limit_bytes=int(cap * 0.9))
    weight_specs = [_const_spec(w1_p.shape), _const_spec((H, 1)),
                    _const_spec(w2_p.shape), _const_spec((H, 1))]

    if L % 128 == 0:
        # Native-layout path: grid over batch, x/out stay (B,C,L)/(B,H,L) in
        # HBM -> no wrapper relayout passes.  One whole sequence per step.
        pos = jnp.arange(L, dtype=jnp.int32)
        not_first = (pos != 0).astype(jnp.float32).reshape(1, L)
        not_last = (pos != L - 1).astype(jnp.float32).reshape(1, L)
        flops = 2 * B * L * 3 * H * (C_in + H)
        bytes_accessed = int(B * L * (C_in * x_bytes + H * o_bytes)
                             + const_bytes + 2 * L * 4)
        return pl.pallas_call(
            kernel,
            out_shape=jax.ShapeDtypeStruct((B, H, L), out_dtype),
            grid_spec=pltpu.PrefetchScalarGridSpec(
                num_scalar_prefetch=0,
                grid=(B,),
                in_specs=[pl.BlockSpec((None, C_in, L), lambda b: (b, 0, 0)),
                          _const_spec((1, L)),
                          _const_spec((1, L))] + weight_specs,
                out_specs=pl.BlockSpec((None, H, L), lambda b: (b, 0, 0))),
            compiler_params=cparams,
            cost_estimate=pl.CostEstimate(flops=flops, transcendentals=0,
                                          bytes_accessed=bytes_accessed),
        )(x, not_first, not_last, w1_p, b1_c, w2_p, b2_c)

    # Folded path (small / non-128-aligned L): fold batch into the lane axis,
    # padding the batch so every block is lane-dense (multiple of 128 lanes).
    bt, b_pad = _plan_folded(B, L, fits)
    n_lanes = bt * L
    grid = (b_pad // bt,)

    xp = x if b_pad == B else jnp.pad(x, ((0, b_pad - B), (0, 0), (0, 0)))
    # TODO(synk): this relayout is an extra HBM pass; the native-layout path
    #             above avoids it whenever L is a multiple of 128.
    x2 = jnp.transpose(xp, (1, 0, 2)).reshape(C_in, b_pad * L)

    pos = jnp.arange(n_lanes, dtype=jnp.int32) % L
    not_first = (pos != 0).astype(jnp.float32).reshape(1, n_lanes)
    not_last = (pos != L - 1).astype(jnp.float32).reshape(1, n_lanes)

    flops = 2 * b_pad * L * 3 * H * (C_in + H)
    bytes_accessed = int(b_pad * L * (C_in * x_bytes + H * o_bytes)
                         + const_bytes + 2 * n_lanes * 4)

    out2 = pl.pallas_call(
        kernel,
        out_shape=jax.ShapeDtypeStruct((H, b_pad * L), out_dtype),
        grid_spec=pltpu.PrefetchScalarGridSpec(
            num_scalar_prefetch=0,
            grid=grid,
            in_specs=[pl.BlockSpec((C_in, n_lanes), lambda n: (0, n)),
                      _const_spec((1, n_lanes)),
                      _const_spec((1, n_lanes))] + weight_specs,
            out_specs=pl.BlockSpec((H, n_lanes), lambda n: (0, n))),
        compiler_params=cparams,
        cost_estimate=pl.CostEstimate(flops=flops, transcendentals=0,
                                      bytes_accessed=bytes_accessed),
    )(x2, not_first, not_last, w1_p, b1_c, w2_p, b2_c)

    out = jnp.transpose(out2.reshape(H, b_pad, L), (1, 0, 2))
    return out[:B] if b_pad != B else out


# --------------------------------------------------------------------------
# Reference & test
# --------------------------------------------------------------------------
def _reference(x, w1, b1, w2, b2):
    """Pure-JAX reference matching a PyTorch Conv1d(k=3, pad=1) stack."""
    dn = ("NCH", "OIH", "NCH")
    h = lax.conv_general_dilated(x, w1, window_strides=(1,),
                                 padding=((1, 1),), dimension_numbers=dn)
    h = h + b1[None, :, None]
    h = lax.conv_general_dilated(h, w2, window_strides=(1,),
                                 padding=((1, 1),), dimension_numbers=dn)
    h = h + b2[None, :, None]
    return h


if __name__ == "__main__":
    key = jax.random.PRNGKey(0)
    kx, k1, k2, k3, k4 = jax.random.split(key, 5)

    B, C_in, L, H = 2, 4, 16, 32   # batch, in-channels, seq len, hidden channels

    x = jax.random.normal(kx, (B, C_in, L), dtype=jnp.float32)
    # Deterministic "PyTorch-like" small uniform init.
    w1 = (jax.random.uniform(k1, (H, C_in, 3), dtype=jnp.float32) - 0.5) * 0.2
    b1 = (jax.random.uniform(k2, (H,), dtype=jnp.float32) - 0.5) * 0.2
    w2 = (jax.random.uniform(k3, (H, H, 3), dtype=jnp.float32) - 0.5) * 0.2
    b2 = (jax.random.uniform(k4, (H,), dtype=jnp.float32) - 0.5) * 0.2

    out = conv_encoder(x, w1, b1, w2, b2)
    out = jax.block_until_ready(out)

    ref = _reference(x, w1, b1, w2, b2)
    assert out.shape == (B, H, L), out.shape
    # bf16 MXU operands with f32 accumulation -> relaxed tolerance.
    assert jnp.allclose(out, ref, atol=1e-2, rtol=1e-2), (
        float(jnp.max(jnp.abs(out - ref))))

    print("KERNEL_OK")
</pallas_src>

<mosaic_0001>
module attributes {stable_mosaic.version = 11 : i64} {
  func.func @_conv_encoder_kernel(%arg0: i32, %arg1: memref<4x128xf32, #tpu.memory_space<vmem>>, %arg2: memref<1x128xf32, #tpu.memory_space<vmem>>, %arg3: memref<1x128xf32, #tpu.memory_space<vmem>>, %arg4: memref<3x32x4xf32, #tpu.memory_space<vmem>>, %arg5: memref<32x1xf32, #tpu.memory_space<vmem>>, %arg6: memref<3x32x32xbf16, #tpu.memory_space<vmem>>, %arg7: memref<32x1xf32, #tpu.memory_space<vmem>>, %arg8: memref<32x128xf32, #tpu.memory_space<vmem>>) attributes {dimension_semantics = [#tpu.dimension_semantics<parallel>], iteration_bounds = array<i64: 1>, scalar_prefetch = 0 : i64, scratch_operands = 0 : i64, tpu.core_type = #tpu.core_type<tc>, window_params = [{transform_indices = @transform_0, window_bounds = array<i64: 4, 128>}, {pipeline_mode = #tpu.pipeline_mode<synchronous>, transform_indices = @transform_1, window_bounds = array<i64: 1, 128>}, {pipeline_mode = #tpu.pipeline_mode<synchronous>, transform_indices = @transform_2, window_bounds = array<i64: 1, 128>}, {pipeline_mode = #tpu.pipeline_mode<synchronous>, transform_indices = @transform_3, window_bounds = array<i64: 3, 32, 4>}, {pipeline_mode = #tpu.pipeline_mode<synchronous>, transform_indices = @transform_4, window_bounds = array<i64: 32, 1>}, {pipeline_mode = #tpu.pipeline_mode<synchronous>, transform_indices = @transform_5, window_bounds = array<i64: 3, 32, 32>}, {pipeline_mode = #tpu.pipeline_mode<synchronous>, transform_indices = @transform_6, window_bounds = array<i64: 32, 1>}, {transform_indices = @transform_7, window_bounds = array<i64: 32, 128>}]} {
    %c0 = arith.constant 0 : index
    %c0_0 = arith.constant 0 : index
    %0 = vector.load %arg2[%c0, %c0_0] : memref<1x128xf32, #tpu.memory_space<vmem>>, vector<1x128xf32>
    %c0_1 = arith.constant 0 : index
    %c0_2 = arith.constant 0 : index
    %1 = vector.load %arg3[%c0_1, %c0_2] : memref<1x128xf32, #tpu.memory_space<vmem>>, vector<1x128xf32>
    %c0_3 = arith.constant 0 : index
    %c0_4 = arith.constant 0 : index
    %2 = vector.load %arg1[%c0_3, %c0_4] : memref<4x128xf32, #tpu.memory_space<vmem>>, vector<4x128xf32>
    %c1_i32 = arith.constant 1 : i32
    %3 = tpu.dynamic_rotate %2 by %c1_i32 dim 1 : vector<4x128xf32>, i32 -> vector<4x128xf32>
    %4 = vector.broadcast %0 : vector<1x128xf32> to vector<4x128xf32>
    %5 = arith.mulf %3, %4 : vector<4x128xf32>
    %c127_i32 = arith.constant 127 : i32
    %6 = tpu.dynamic_rotate %2 by %c127_i32 dim 1 : vector<4x128xf32>, i32 -> vector<4x128xf32>
    %7 = vector.broadcast %1 : vector<1x128xf32> to vector<4x128xf32>
    %8 = arith.mulf %6, %7 : vector<4x128xf32>
    %c0_5 = arith.constant 0 : index
    %c0_6 = arith.constant 0 : index
    %c0_7 = arith.constant 0 : index
    %9 = vector.load %arg4[%c0_5, %c0_6, %c0_7] : memref<3x32x4xf32, #tpu.memory_space<vmem>>, vector<3x32x4xf32>
    %cst = arith.constant 0.000000e+00 : f32
    %10 = vector.broadcast %cst : f32 to vector<32x128xf32>
    %11 = vector.extract_strided_slice %9 {offsets = [0, 0, 0], sizes = [1, 32, 1], strides = [1, 1, 1]} : vector<3x32x4xf32> to vector<1x32x1xf32>
    %12 = vector.shape_cast %11 : vector<1x32x1xf32> to vector<32x1xf32>
    %13 = vector.extract_strided_slice %5 {offsets = [0, 0], sizes = [1, 128], strides = [1, 1]} : vector<4x128xf32> to vector<1x128xf32>
    %14 = vector.broadcast %12 : vector<32x1xf32> to vector<32x128xf32>
    %15 = vector.broadcast %13 : vector<1x128xf32> to vector<32x128xf32>
    %16 = arith.mulf %14, %15 : vector<32x128xf32>
    %17 = arith.addf %10, %16 : vector<32x128xf32>
    %18 = vector.extract_strided_slice %9 {offsets = [0, 0, 1], sizes = [1, 32, 1], strides = [1, 1, 1]} : vector<3x32x4xf32> to vector<1x32x1xf32>
    %19 = vector.shape_cast %18 : vector<1x32x1xf32> to vector<32x1xf32>
    %20 = vector.extract_strided_slice %5 {offsets = [1, 0], sizes = [1, 128], strides = [1, 1]} : vector<4x128xf32> to vector<1x128xf32>
    %21 = vector.broadcast %19 : vector<32x1xf32> to vector<32x128xf32>
    %22 = vector.broadcast %20 : vector<1x128xf32> to vector<32x128xf32>
    %23 = arith.mulf %21, %22 : vector<32x128xf32>
    %24 = arith.addf %17, %23 : vector<32x128xf32>
    %25 = vector.extract_strided_slice %9 {offsets = [0, 0, 2], sizes = [1, 32, 1], strides = [1, 1, 1]} : vector<3x32x4xf32> to vector<1x32x1xf32>
    %26 = vector.shape_cast %25 : vector<1x32x1xf32> to vector<32x1xf32>
    %27 = vector.extract_strided_slice %5 {offsets = [2, 0], sizes = [1, 128], strides = [1, 1]} : vector<4x128xf32> to vector<1x128xf32>
    %28 = vector.broadcast %26 : vector<32x1xf32> to vector<32x128xf32>
    %29 = vector.broadcast %27 : vector<1x128xf32> to vector<32x128xf32>
    %30 = arith.mulf %28, %29 : vector<32x128xf32>
    %31 = arith.addf %24, %30 : vector<32x128xf32>
    %32 = vector.extract_strided_slice %9 {offsets = [0, 0, 3], sizes = [1, 32, 1], strides = [1, 1, 1]} : vector<3x32x4xf32> to vector<1x32x1xf32>
    %33 = vector.shape_cast %32 : vector<1x32x1xf32> to vector<32x1xf32>
    %34 = vector.extract_strided_slice %5 {offsets = [3, 0], sizes = [1, 128], strides = [1, 1]} : vector<4x128xf32> to vector<1x128xf32>
    %35 = vector.broadcast %33 : vector<32x1xf32> to vector<32x128xf32>
    %36 = vector.broadcast %34 : vector<1x128xf32> to vector<32x128xf32>
    %37 = arith.mulf %35, %36 : vector<32x128xf32>
    %38 = arith.addf %31, %37 : vector<32x128xf32>
    %39 = vector.extract_strided_slice %9 {offsets = [1, 0, 0], sizes = [1, 32, 1], strides = [1, 1, 1]} : vector<3x32x4xf32> to vector<1x32x1xf32>
    %40 = vector.shape_cast %39 : vector<1x32x1xf32> to vector<32x1xf32>
    %41 = vector.extract_strided_slice %2 {offsets = [0, 0], sizes = [1, 128], strides = [1, 1]} : vector<4x128xf32> to vector<1x128xf32>
    %42 = vector.broadcast %40 : vector<32x1xf32> to vector<32x128xf32>
    %43 = vector.broadcast %41 : vector<1x128xf32> to vector<32x128xf32>
    %44 = arith.mulf %42, %43 : vector<32x128xf32>
    %45 = arith.addf %38, %44 : vector<32x128xf32>
    %46 = vector.extract_strided_slice %9 {offsets = [1, 0, 1], sizes = [1, 32, 1], strides = [1, 1, 1]} : vector<3x32x4xf32> to vector<1x32x1xf32>
    %47 = vector.shape_cast %46 : vector<1x32x1xf32> to vector<32x1xf32>
    %48 = vector.extract_strided_slice %2 {offsets = [1, 0], sizes = [1, 128], strides = [1, 1]} : vector<4x128xf32> to vector<1x128xf32>
    %49 = vector.broadcast %47 : vector<32x1xf32> to vector<32x128xf32>
    %50 = vector.broadcast %48 : vector<1x128xf32> to vector<32x128xf32>
    %51 = arith.mulf %49, %50 : vector<32x128xf32>
    %52 = arith.addf %45, %51 : vector<32x128xf32>
    %53 = vector.extract_strided_slice %9 {offsets = [1, 0, 2], sizes = [1, 32, 1], strides = [1, 1, 1]} : vector<3x32x4xf32> to vector<1x32x1xf32>
    %54 = vector.shape_cast %53 : vector<1x32x1xf32> to vector<32x1xf32>
    %55 = vector.extract_strided_slice %2 {offsets = [2, 0], sizes = [1, 128], strides = [1, 1]} : vector<4x128xf32> to vector<1x128xf32>
    %56 = vector.broadcast %54 : vector<32x1xf32> to vector<32x128xf32>
    %57 = vector.broadcast %55 : vector<1x128xf32> to vector<32x128xf32>
    %58 = arith.mulf %56, %57 : vector<32x128xf32>
    %59 = arith.addf %52, %58 : vector<32x128xf32>
    %60 = vector.extract_strided_slice %9 {offsets = [1, 0, 3], sizes = [1, 32, 1], strides = [1, 1, 1]} : vector<3x32x4xf32> to vector<1x32x1xf32>
    %61 = vector.shape_cast %60 : vector<1x32x1xf32> to vector<32x1xf32>
    %62 = vector.extract_strided_slice %2 {offsets = [3, 0], sizes = [1, 128], strides = [1, 1]} : vector<4x128xf32> to vector<1x128xf32>
    %63 = vector.broadcast %61 : vector<32x1xf32> to vector<32x128xf32>
    %64 = vector.broadcast %62 : vector<1x128xf32> to vector<32x128xf32>
    %65 = arith.mulf %63, %64 : vector<32x128xf32>
    %66 = arith.addf %59, %65 : vector<32x128xf32>
    %67 = vector.extract_strided_slice %9 {offsets = [2, 0, 0], sizes = [1, 32, 1], strides = [1, 1, 1]} : vector<3x32x4xf32> to vector<1x32x1xf32>
    %68 = vector.shape_cast %67 : vector<1x32x1xf32> to vector<32x1xf32>
    %69 = vector.extract_strided_slice %8 {offsets = [0, 0], sizes = [1, 128], strides = [1, 1]} : vector<4x128xf32> to vector<1x128xf32>
    %70 = vector.broadcast %68 : vector<32x1xf32> to vector<32x128xf32>
    %71 = vector.broadcast %69 : vector<1x128xf32> to vector<32x128xf32>
    %72 = arith.mulf %70, %71 : vector<32x128xf32>
    %73 = arith.addf %66, %72 : vector<32x128xf32>
    %74 = vector.extract_strided_slice %9 {offsets = [2, 0, 1], sizes = [1, 32, 1], strides = [1, 1, 1]} : vector<3x32x4xf32> to vector<1x32x1xf32>
    %75 = vector.shape_cast %74 : vector<1x32x1xf32> to vector<32x1xf32>
    %76 = vector.extract_strided_slice %8 {offsets = [1, 0], sizes = [1, 128], strides = [1, 1]} : vector<4x128xf32> to vector<1x128xf32>
    %77 = vector.broadcast %75 : vector<32x1xf32> to vector<32x128xf32>
    %78 = vector.broadcast %76 : vector<1x128xf32> to vector<32x128xf32>
    %79 = arith.mulf %77, %78 : vector<32x128xf32>
    %80 = arith.addf %73, %79 : vector<32x128xf32>
    %81 = vector.extract_strided_slice %9 {offsets = [2, 0, 2], sizes = [1, 32, 1], strides = [1, 1, 1]} : vector<3x32x4xf32> to vector<1x32x1xf32>
    %82 = vector.shape_cast %81 : vector<1x32x1xf32> to vector<32x1xf32>
    %83 = vector.extract_strided_slice %8 {offsets = [2, 0], sizes = [1, 128], strides = [1, 1]} : vector<4x128xf32> to vector<1x128xf32>
    %84 = vector.broadcast %82 : vector<32x1xf32> to vector<32x128xf32>
    %85 = vector.broadcast %83 : vector<1x128xf32> to vector<32x128xf32>
    %86 = arith.mulf %84, %85 : vector<32x128xf32>
    %87 = arith.addf %80, %86 : vector<32x128xf32>
    %88 = vector.extract_strided_slice %9 {offsets = [2, 0, 3], sizes = [1, 32, 1], strides = [1, 1, 1]} : vector<3x32x4xf32> to vector<1x32x1xf32>
    %89 = vector.shape_cast %88 : vector<1x32x1xf32> to vector<32x1xf32>
    %90 = vector.extract_strided_slice %8 {offsets = [3, 0], sizes = [1, 128], strides = [1, 1]} : vector<4x128xf32> to vector<1x128xf32>
    %91 = vector.broadcast %89 : vector<32x1xf32> to vector<32x128xf32>
    %92 = vector.broadcast %90 : vector<1x128xf32> to vector<32x128xf32>
    %93 = arith.mulf %91, %92 : vector<32x128xf32>
    %94 = arith.addf %87, %93 : vector<32x128xf32>
    %c0_8 = arith.constant 0 : index
    %c0_9 = arith.constant 0 : index
    %95 = vector.load %arg5[%c0_8, %c0_9] : memref<32x1xf32, #tpu.memory_space<vmem>>, vector<32x1xf32>
    %96 = vector.broadcast %95 : vector<32x1xf32> to vector<32x128xf32>
    %97 = arith.addf %94, %96 : vector<32x128xf32>
    %c1_i32_10 = arith.constant 1 : i32
    %98 = tpu.dynamic_rotate %97 by %c1_i32_10 dim 1 : vector<32x128xf32>, i32 -> vector<32x128xf32>
    %99 = vector.broadcast %0 : vector<1x128xf32> to vector<32x128xf32>
    %100 = arith.mulf %98, %99 : vector<32x128xf32>
    %c127_i32_11 = arith.constant 127 : i32
    %101 = tpu.dynamic_rotate %97 by %c127_i32_11 dim 1 : vector<32x128xf32>, i32 -> vector<32x128xf32>
    %102 = vector.broadcast %1 : vector<1x128xf32> to vector<32x128xf32>
    %103 = arith.mulf %101, %102 : vector<32x128xf32>
    %c1 = arith.constant 1 : index
    %c0_12 = arith.constant 0 : index
    %c0_13 = arith.constant 0 : index
    %104 = vector.load %arg6[%c1, %c0_12, %c0_13] : memref<3x32x32xbf16, #tpu.memory_space<vmem>>, vector<1x32x32xbf16>
    %105 = vector.shape_cast %104 : vector<1x32x32xbf16> to vector<32x32xbf16>
    %106 = arith.truncf %97 : vector<32x128xf32> to vector<32x128xbf16>
    %cst_14 = arith.constant dense<0.000000e+00> : vector<32x128xf32>
    %107 = tpu.matmul %105, %106, %cst_14 {dimension_numbers = #tpu.dot_dimension_numbers<[1], [0], [0], [1], [0, 0, 1, 1], [], []>} : vector<32x32xbf16>, vector<32x128xbf16>, vector<32x128xf32> -> vector<32x128xf32>
    %c0_15 = arith.constant 0 : index
    %c0_16 = arith.constant 0 : index
    %c0_17 = arith.constant 0 : index
    %108 = vector.load %arg6[%c0_15, %c0_16, %c0_17] : memref<3x32x32xbf16, #tpu.memory_space<vmem>>, vector<1x32x32xbf16>
    %109 = vector.shape_cast %108 : vector<1x32x32xbf16> to vector<32x32xbf16>
    %110 = arith.truncf %100 : vector<32x128xf32> to vector<32x128xbf16>
    %cst_18 = arith.constant dense<0.000000e+00> : vector<32x128xf32>
    %111 = tpu.matmul %109, %110, %cst_18 {dimension_numbers = #tpu.dot_dimension_numbers<[1], [0], [0], [1], [0, 0, 1, 1], [], []>} : vector<32x32xbf16>, vector<32x128xbf16>, vector<32x128xf32> -> vector<32x128xf32>
    %112 = arith.addf %107, %111 : vector<32x128xf32>
    %c2 = arith.constant 2 : index
    %c0_19 = arith.constant 0 : index
    %c0_20 = arith.constant 0 : index
    %113 = vector.load %arg6[%c2, %c0_19, %c0_20] : memref<3x32x32xbf16, #tpu.memory_space<vmem>>, vector<1x32x32xbf16>
    %114 = vector.shape_cast %113 : vector<1x32x32xbf16> to vector<32x32xbf16>
    %115 = arith.truncf %103 : vector<32x128xf32> to vector<32x128xbf16>
    %cst_21 = arith.constant dense<0.000000e+00> : vector<32x128xf32>
    %116 = tpu.matmul %114, %115, %cst_21 {dimension_numbers = #tpu.dot_dimension_numbers<[1], [0], [0], [1], [0, 0, 1, 1], [], []>} : vector<32x32xbf16>, vector<32x128xbf16>, vector<32x128xf32> -> vector<32x128xf32>
    %117 = arith.addf %112, %116 : vector<32x128xf32>
    %c0_22 = arith.constant 0 : index
    %c0_23 = arith.constant 0 : index
    %118 = vector.load %arg7[%c0_22, %c0_23] : memref<32x1xf32, #tpu.memory_space<vmem>>, vector<32x1xf32>
    %119 = vector.broadcast %118 : vector<32x1xf32> to vector<32x128xf32>
    %120 = arith.addf %117, %119 : vector<32x128xf32>
    %c0_24 = arith.constant 0 : index
    %c0_25 = arith.constant 0 : index
    %121 = vector.load %arg8[%c0_24, %c0_25] : memref<32x128xf32, #tpu.memory_space<vmem>>, vector<32x128xf32>
    tpu.vector_store %arg8[%c0_24, %c0_25], %120 {strides = array<i32>} : memref<32x128xf32, #tpu.memory_space<vmem>>, vector<32x128xf32>,
    return
  }
  func.func @transform_0(%arg0: i32) -> (i32, i32) {
    %c0_i32 = arith.constant 0 : i32
    %c0_i32_0 = arith.constant 0 : i32
    return %c0_i32, %arg0 : i32, i32
  }
  func.func @transform_1(%arg0: i32) -> (i32, i32) {
    %c0_i32 = arith.constant 0 : i32
    %c0_i32_0 = arith.constant 0 : i32
    %c0_i32_1 = arith.constant 0 : i32
    return %c0_i32, %c0_i32_0 : i32, i32
  }
  func.func @transform_2(%arg0: i32) -> (i32, i32) {
    %c0_i32 = arith.constant 0 : i32
    %c0_i32_0 = arith.constant 0 : i32
    %c0_i32_1 = arith.constant 0 : i32
    return %c0_i32, %c0_i32_0 : i32, i32
  }
  func.func @transform_3(%arg0: i32) -> (i32, i32, i32) {
    %c0_i32 = arith.constant 0 : i32
    %c0_i32_0 = arith.constant 0 : i32
    %c0_i32_1 = arith.constant 0 : i32
    %c0_i32_2 = arith.constant 0 : i32
    return %c0_i32, %c0_i32_0, %c0_i32_1 : i32, i32, i32
  }
  func.func @transform_4(%arg0: i32) -> (i32, i32) {
    %c0_i32 = arith.constant 0 : i32
    %c0_i32_0 = arith.constant 0 : i32
    %c0_i32_1 = arith.constant 0 : i32
    return %c0_i32, %c0_i32_0 : i32, i32
  }
  func.func @transform_5(%arg0: i32) -> (i32, i32, i32) {
    %c0_i32 = arith.constant 0 : i32
    %c0_i32_0 = arith.constant 0 : i32
    %c0_i32_1 = arith.constant 0 : i32
    %c0_i32_2 = arith.constant 0 : i32
    return %c0_i32, %c0_i32_0, %c0_i32_1 : i32, i32, i32
  }
  func.func @transform_6(%arg0: i32) -> (i32, i32) {
    %c0_i32 = arith.constant 0 : i32
    %c0_i32_0 = arith.constant 0 : i32
    %c0_i32_1 = arith.constant 0 : i32
    return %c0_i32, %c0_i32_0 : i32, i32
  }
  func.func @transform_7(%arg0: i32) -> (i32, i32) {
    %c0_i32 = arith.constant 0 : i32
    %c0_i32_0 = arith.constant 0 : i32
    return %c0_i32, %arg0 : i32, i32
  }
}

</mosaic_0001>

<bundles_post_ra>
// kernel: conv_encoder.1
= control target key start
LH: loop header
LB: loop body
LE: loop exit
PB: predicated region body
PF: predicated region fallthrough
CT: control target
= control target key end

     0   :  { %v815_v0 = vmov 1   ;;  %s816_s28 = smov 1   ;;  %v817_v5 = vmov 2   ;;  %v818_v6 = vmov 0   ;;  %s819_s15 = smov 127   ;;  %v820_v11 = vmov 3   ;;  %s1083_s3 = inlined_call_operand.vmem [shape: f32[3,32,4], index: 3, kind: input, shape index: {}]   ;;  %s1084_s0 = inlined_call_operand.vmem [shape: f32[4,128], index: 0, kind: input, shape index: {}]   ;;  %s1085_s4 = inlined_call_operand.vmem [shape: f32[32,1], index: 4, kind: input, shape index: {}]   ;;  %s1086_s1 = inlined_call_operand.vmem [shape: f32[1,128], index: 1, kind: input, shape index: {}]   ;;  %s1087_s2 = inlined_call_operand.vmem [shape: f32[1,128], index: 2, kind: input, shape index: {}]   ;;  %s1088_s5 = inlined_call_operand.vmem [shape: bf16[3,32,32], index: 5, kind: input, shape index: {}]   ;;  %s1089_s6 = inlined_call_operand.vmem [shape: f32[32,1], index: 6, kind: input, shape index: {}]   ;;  %s1090_s7 = inlined_call_operand.vmem [shape: f32[32,128], index: 7, kind: output, shape index: {}]  }
   0x1   :  { %780 = vset.pattern.permute.xlu1 %v815_v0  ;;  %v50_v1 = vld [vmem:[%s1083_s3 + $0x10] sm:$0xff]  ;;  %v868_v2 = vld [vmem:[%s1084_s0] sm:$0xf]  ;;  %783 = vset.pattern.permute.xlu0 %v815_v0  ;;  %v51_v3 = vld [vmem:[%s1083_s3 + $0x18] sm:$0xff]  ;;  %v80_v19 = vlaneseq  ;;  %vm483_vm0 = vcmask 261120  }
   0x2   :  { %101 = vperm.xlu1 %780, %v50_v1   ;;  %30 = vrot.lane.b32.xlu0 %v868_v2, %s816_s28  ;;  %v48_v4 = vld [vmem:[%s1083_s3] sm:$0xff]  ;;  %v54_v7 = vld [vmem:[%s1083_s3 + $0x30] sm:$0xff]  ;;  %v49_v8 = vld [vmem:[%s1083_s3 + $0x8] sm:$0xff] }
   0x3   :  { %v52_v9 = vld [vmem:[%s1083_s3 + $0x20] sm:$0xff]  ;;  %v55_v12 = vld [vmem:[%s1083_s3 + $0x38] sm:$0xff]  ;;  %v53_v13 = vld [vmem:[%s1083_s3 + $0x28] sm:$0xff]  ;;  %v81_v20 = vshrl.u32 %v80_v19, 7 }
   0x4   :  { %v897_v10 = vld [vmem:[%s1083_s3 + $0x40] sm:$0xff]  ;;  %v58_v14 = vld [vmem:[%s1083_s3 + $0x50] sm:$0xff]  ;;  %v59_v15 = vld [vmem:[%s1083_s3 + $0x58] sm:$0xff] }
   0x5   :  { %v924_v16 = vld [vmem:[%s1083_s3 + $0x48] sm:$0xff]  ;;  %v410_v17 = vld [vmem:[%s1085_s4 + $0x10] sm:$0xff]  ;;  %v946_v21 = vld [vmem:[%s1086_s1] ss:$0 sm:$0xff]  ;;  %v951_v25 = vsub.s32 1, %v81_v20  ;;  %v953_v26 = vsub.s32 0, %v81_v20 }
   0x6   :  { %105 = vperm.xlu1 %780, %v51_v3   ;;  %93 = vperm.xlu0 %783, %v48_v4   ;;  %v409_v18 = vld [vmem:[%s1085_s4 + $0x8] sm:$0xff]  ;;  %v958_v29 = vsub.s32 2, %v81_v20  ;;  %v977_v49 = vsub.s32 3, %v81_v20  ;;  %v411_v55 = vld [vmem:[%s1085_s4 + $0x18] sm:$0xff]  ;;  %v408_v62 = vld [vmem:[%s1085_s4] sm:$0xff] }
   0x7   :  { %v199_v47 = vrot.slane %v868_v2, %v953_v26 }
   0xa   :  { %781 = vset.pattern.permute.xlu1 %v817_v5  ;;  %784 = vset.pattern.permute.xlu0 %v818_v6 }
   0xb   :  { %129 = vperm.xlu1 %781, %v50_v1   ;;  %72 = vperm.xlu0 %784, %v50_v1  }
   0xf   :  { %782 = vset.pattern.permute.xlu1 %v818_v6  ;;  %77 = vperm.xlu0 %784, %v51_v3  }
  0x10   :  { %62 = vperm.xlu1 %782, %v48_v4  }
  0x13   :  { %188 = vperm.xlu0 %784, %v54_v7  }
  0x14   :  { %67 = vperm.xlu1 %782, %v49_v8  }
  0x17   :  { %178 = vperm.xlu0 %784, %v52_v9  }
  0x18   :  { %785 = vset.pattern.permute.xlu1 %v815_v0 }
  0x19   :  { %97 = vperm.xlu1 %785, %v49_v8  }
  0x1b   :  { %39 = vrot.lane.b32.xlu0 %v868_v2, %s819_s15 }
  0x1d   :  { %786 = vset.pattern.permute.xlu1 %v820_v11 }
  0x1e   :  { %157 = vperm.xlu1 %786, %v50_v1  }
  0x1f   :  { %294 = vperm.xlu0 %784, %v897_v10  }
  0x22   :  { %787 = vset.pattern.permute.xlu1 %v817_v5 }
  0x23   :  { %121 = vperm.xlu1 %787, %v48_v4   ;;  %799 = vset.pattern.permute.xlu0 %v820_v11 }
  0x24   :  { %161 = vperm.xlu0 %799, %v51_v3  }
  0x27   :  { %125 = vperm.xlu1 %787, %v49_v8  }
  0x28   :  { %153 = vperm.xlu0 %799, %v49_v8  }
  0x2b   :  { %788 = vset.pattern.permute.xlu1 %v818_v6 }
  0x2c   :  { %193 = vperm.xlu1 %788, %v55_v12   ;;  %273 = vperm.xlu0 %799, %v54_v7  }
  0x30   :  { %789 = vset.pattern.permute.xlu1 %v820_v11  ;;  %269 = vperm.xlu0 %799, %v53_v13  }
  0x31   :  { %149 = vperm.xlu1 %789, %v48_v4  }
  0x34   :  { %389 = vperm.xlu0 %799, %v58_v14  }
  0x35   :  { %790 = vset.pattern.permute.xlu1 %v815_v0 }
  0x36   :  { %217 = vperm.xlu1 %790, %v54_v7  }
  0x38   :  { %803 = vset.pattern.permute.xlu0 %v817_v5 }
  0x39   :  { %133 = vperm.xlu0 %803, %v51_v3  }
  0x3a   :  { %221 = vperm.xlu1 %790, %v55_v12  }
  0x3d   :  { %249 = vperm.xlu0 %803, %v55_v12  }
  0x3e   :  { %791 = vset.pattern.permute.xlu1 %v818_v6 }
  0x3f   :  { %183 = vperm.xlu1 %791, %v53_v13  }
  0x41   :  { %241 = vperm.xlu0 %803, %v53_v13  }
  0x43   :  { %792 = vset.pattern.permute.xlu1 %v817_v5 }
  0x44   :  { %245 = vperm.xlu1 %792, %v54_v7  }
  0x45   :  { %365 = vperm.xlu0 %803, %v59_v15  }
  0x48   :  { %793 = vset.pattern.permute.xlu1 %v815_v0 }
  0x49   :  { %209 = vperm.xlu1 %793, %v52_v9   ;;  %357 = vperm.xlu0 %803, %v924_v16  }
  0x4d   :  { %213 = vperm.xlu1 %793, %v53_v13   ;;  %807 = vset.pattern.permute.xlu0 %v818_v6 }
  0x4e   :  { %424 = vperm.xlu0 %807, %v410_v17  }
  0x51   :  { %794 = vset.pattern.permute.xlu1 %v820_v11 }
  0x52   :  { %277 = vperm.xlu1 %794, %v55_v12   ;;  %419 = vperm.xlu0 %807, %v409_v18  }
  0x56   :  { %795 = vset.pattern.permute.xlu1 %v817_v5 }
  0x57   :  { %237 = vperm.xlu1 %795, %v52_v9  }
  0x5b   :  { %796 = vset.pattern.permute.xlu1 %v818_v6 }
  0x5c   :  { %304 = vperm.xlu1 %796, %v58_v14  }
  0x60   :  { %309 = vperm.xlu1 %796, %v59_v15  }
  0x64   :  { %797 = vset.pattern.permute.xlu1 %v820_v11 }
  0x65   :  { %265 = vperm.xlu1 %797, %v52_v9  }
  0x69   :  { %798 = vset.pattern.permute.xlu1 %v815_v0 }
  0x6a   :  { %333 = vperm.xlu1 %798, %v58_v14  }
  0x6e   :  { %337 = vperm.xlu1 %798, %v59_v15  }
  0x72   :  { %800 = vset.pattern.permute.xlu1 %v818_v6 }
  0x73   :  { %299 = vperm.xlu1 %800, %v924_v16  }
  0x74   :  { %v31_v22 = vpop.permute.xlu0 %30 }
  0x75   :  { %v38_v24 = vmul.f32 %v946_v21, %v31_v22 }
  0x77   :  { %801 = vset.pattern.permute.xlu1 %v817_v5  ;;  %v961_v30 = vrot.slane %v38_v24, %v951_v25  ;;  %v83_v31 = vrot.slane %v38_v24, %v953_v26  ;;  %v966_v32 = vrot.slane %v38_v24, %v958_v29  ;;  %v167_v56 = vrot.slane %v38_v24, %v977_v49 }
  0x78   :  { %361 = vperm.xlu1 %801, %v58_v14  }
  0x7c   :  { %802 = vset.pattern.permute.xlu1 %v815_v0 }
  0x7d   :  { %v102_v23 = vpop.permute.xlu1 %101  ;;  %325 = vperm.xlu1 %802, %v897_v10  }
  0x7e   :  { %v114_v35 = vmul.f32 %v961_v30, %v102_v23 }
  0x81   :  { %v955_v27 = vpop.permute.xlu1 %105  ;;  %329 = vperm.xlu1 %802, %v924_v16   ;;  %v94_v28 = vpop.permute.xlu0 %93 }
  0x82   :  { %v112_v39 = vmul.f32 %v961_v30, %v94_v28  ;;  %v115_v24 = vmul.f32 %v961_v30, %v955_v27 }
  0x85   :  { %804 = vset.pattern.permute.xlu1 %v820_v11 }
  0x86   :  { %v130_v33 = vpop.permute.xlu1 %129  ;;  %393 = vperm.xlu1 %804, %v59_v15   ;;  %v73_v34 = vpop.permute.xlu0 %72 }
  0x87   :  { %v86_v36 = vmul.f32 %v83_v31, %v73_v34  ;;  %v142_v37 = vmul.f32 %v966_v32, %v130_v33 }
  0x89   :  { %v118_v38 = vadd.f32 %v114_v35, %v86_v36 }
  0x8a   :  { %805 = vset.pattern.permute.xlu1 %v817_v5  ;;  %v78_v40 = vpop.permute.xlu0 %77 }
  0x8b   :  { %353 = vperm.xlu1 %805, %v897_v10   ;;  %v63_v41 = vpop.permute.xlu1 %62  ;;  %v146_v42 = vadd.f32 %v142_v37, %v118_v38  ;;  %v87_v19 = vmul.f32 %v83_v31, %v78_v40 }
  0x8c   :  { %v84_v43 = vmul.f32 %v83_v31, %v63_v41 }
  0x8d   :  { %v119_v34 = vadd.f32 %v115_v24, %v87_v19 }
  0x8e   :  { %v116_v44 = vadd.f32 %v112_v39, %v84_v43  ;;  %v189_v45 = vpop.permute.xlu0 %188 }
  0x8f   :  { %806 = vset.pattern.permute.xlu1 %v820_v11  ;;  %v68_v46 = vpop.permute.xlu1 %67  ;;  %v202_v59 = vmul.f32 %v199_v47, %v189_v45 }
  0x90   :  { %381 = vperm.xlu1 %806, %v897_v10   ;;  %v85_v52 = vmul.f32 %v83_v31, %v68_v46 }
  0x92   :  { %v179_v48 = vpop.permute.xlu0 %178 }
  0x93   :  { %v200_v50 = vmul.f32 %v199_v47, %v179_v48 }
  0x94   :  { %385 = vperm.xlu1 %806, %v924_v16   ;;  %v98_v51 = vpop.permute.xlu1 %97  ;;  %v227_v16 = vrot.slane %v868_v2, %v951_v25 }
  0x95   :  { %v113_v53 = vmul.f32 %v961_v30, %v98_v51  ;;  %v283_v30 = vrot.slane %v868_v2, %v977_v49 }
  0x96   :  { %v981_v54 = vpop.permute.xlu0 %39 }
  0x97   :  { %v117_v57 = vadd.f32 %v113_v53, %v85_v52 }
  0x98   :  { %808 = vset.pattern.permute.xlu1 %v818_v6 }
  0x99   :  { %429 = vperm.xlu1 %808, %v411_v55   ;;  %v158_v58 = vpop.permute.xlu1 %157 }
  0x9a   :  { %v170_v60 = vmul.f32 %v167_v56, %v158_v58  ;;  %v988_v61 = vpop.permute.xlu0 %294 }
  0x9c   :  { %v174_v63 = vadd.f32 %v170_v60, %v146_v42  ;;  %v255_v42 = vrot.slane %v868_v2, %v958_v29 }
  0x9d   :  { %414 = vperm.xlu1 %808, %v408_v62  }
  0x9e   :  { %v122_v0 = vpop.permute.xlu1 %121  ;;  %v206_v1 = vadd.f32 %v202_v59, %v174_v63 }
  0x9f   :  { %v140_v3 = vmul.f32 %v966_v32, %v122_v0  ;;  %v162_v4 = vpop.permute.xlu0 %161 }
  0xa0   :  { %v171_v35 = vmul.f32 %v167_v56, %v162_v4 }
  0xa1   :  { %v144_v5 = vadd.f32 %v140_v3, %v116_v44 }
  0xa2   :  { %v126_v7 = vpop.permute.xlu1 %125 }
  0xa3   :  { %v141_v6 = vmul.f32 %v966_v32, %v126_v7  ;;  %v154_v8 = vpop.permute.xlu0 %153 }
  0xa4   :  { %v169_v39 = vmul.f32 %v167_v56, %v154_v8 }
  0xa5   :  { %v145_v9 = vadd.f32 %v141_v6, %v117_v57 }
  0xa7   :  { %v194_v10 = vpop.permute.xlu1 %193  ;;  %v274_v11 = vpop.permute.xlu0 %273  ;;  %v173_v44 = vadd.f32 %v169_v39, %v145_v9 }
  0xa8   :  { %v203_v12 = vmul.f32 %v199_v47, %v194_v10  ;;  %v286_v52 = vmul.f32 %v283_v30, %v274_v11  ;;  %v1009_v11 = vld [vmem:[%s1087_s2] ss:$0 sm:$0xff] }
  0xab   :  { %v270_v13 = vpop.permute.xlu0 %269 }
  0xac   :  { %v150_v14 = vpop.permute.xlu1 %149 }
  0xad   :  { %v168_v15 = vmul.f32 %v167_v56, %v150_v14 }
  0xaf   :  { %v172_v17 = vadd.f32 %v168_v15, %v144_v5  ;;  %v997_v18 = vpop.permute.xlu0 %389 }
  0xb1   :  { %v218_v20 = vpop.permute.xlu1 %217  ;;  %v204_v22 = vadd.f32 %v200_v50, %v172_v17 }
  0xb2   :  { %v230_v23 = vmul.f32 %v227_v16, %v218_v20 }
  0xb4   :  { %v234_v28 = vadd.f32 %v230_v23, %v206_v1  ;;  %v134_v33 = vpop.permute.xlu0 %133 }
  0xb5   :  { %v143_v36 = vmul.f32 %v966_v32, %v134_v33  ;;  %v222_v37 = vpop.permute.xlu1 %221 }
  0xb6   :  { %v231_v38 = vmul.f32 %v227_v16, %v222_v37 }
  0xb7   :  { %v147_v41 = vadd.f32 %v143_v36, %v119_v34 }
  0xb8   :  { %v250_v31 = vpop.permute.xlu0 %249 }
  0xb9   :  { %v175_v40 = vadd.f32 %v171_v35, %v147_v41  ;;  %v259_v27 = vmul.f32 %v255_v42, %v250_v31 }
  0xba   :  { %v184_v43 = vpop.permute.xlu1 %183 }
  0xbb   :  { %v207_v45 = vadd.f32 %v203_v12, %v175_v40  ;;  %v201_v46 = vmul.f32 %v199_v47, %v184_v43  ;;  %v285_v47 = vmul.f32 %v283_v30, %v270_v13  ;;  %v47_v12 = vmul.f32 %v1009_v11, %v981_v54 }
  0xbc   :  { %v242_v59 = vpop.permute.xlu0 %241 }
  0xbd   :  { %v235_v48 = vadd.f32 %v231_v38, %v207_v45  ;;  %v205_v50 = vadd.f32 %v201_v46, %v173_v44  ;;  %v257_v0 = vmul.f32 %v255_v42, %v242_v59  ;;  %v315_v13 = vrot.slane %v47_v12, %v953_v26 }
  0xbe   :  { %v343_v33 = vrot.slane %v47_v12, %v951_v25  ;;  %v399_v36 = vrot.slane %v47_v12, %v977_v49  ;;  %v371_v37 = vrot.slane %v47_v12, %v958_v29 }
  0xbf   :  { %v263_v32 = vadd.f32 %v259_v27, %v235_v48  ;;  %v246_v51 = vpop.permute.xlu1 %245  ;;  %v316_v17 = vmul.f32 %v315_v13, %v988_v61 }
  0xc0   :  { %v258_v53 = vmul.f32 %v255_v42, %v246_v51  ;;  %v366_v24 = vpop.permute.xlu0 %365  ;;  %v402_v61 = vmul.f32 %v399_v36, %v997_v18 }
  0xc2   :  { %v262_v55 = vadd.f32 %v258_v53, %v234_v28 }
  0xc4   :  { %v210_v56 = vpop.permute.xlu1 %209  ;;  %v290_v57 = vadd.f32 %v286_v52, %v262_v55  ;;  %v358_v26 = vpop.permute.xlu0 %357  ;;  %v375_v52 = vmul.f32 %v371_v37, %v366_v24 }
  0xc5   :  { %v228_v58 = vmul.f32 %v227_v16, %v210_v56 }
  0xc7   :  { %v232_v60 = vadd.f32 %v228_v58, %v204_v22 }
  0xc8   :  { %v214_v62 = vpop.permute.xlu1 %213 }
  0xc9   :  { %v229_v63 = vmul.f32 %v227_v16, %v214_v62  ;;  %v425_v31 = vpop.permute.xlu0 %424 }
  0xcb   :  { %v233_v1 = vadd.f32 %v229_v63, %v205_v50 }
  0xcd   :  { %v261_v3 = vadd.f32 %v257_v0, %v233_v1  ;;  %v278_v4 = vpop.permute.xlu1 %277  ;;  %v809_v1 = vld [vmem:[%s1088_s5] sm:$0xff]  }
  0xce   :  { %v287_v2 = vmul.f32 %v283_v30, %v278_v4  ;;  %v810_v4 = vld [vmem:[%s1088_s5 + $0x10] sm:$0xff]   ;;  %754 = vmatprep.mubr.msk.bf16.mxu0 %vm483_vm0, %v809_v1 }
  0xcf   :  { %v289_v5 = vadd.f32 %v285_v47, %v261_v3  ;;  %762 = vmatprep.mubr.msk.bf16.mxu1 %vm483_vm0, %v810_v4 }
  0xd0   :  { %v291_v7 = vadd.f32 %v287_v2, %v263_v32 }
  0xd2   :  { %v238_v6 = vpop.permute.xlu1 %237 }
  0xd3   :  { %v256_v8 = vmul.f32 %v255_v42, %v238_v6  ;;  %v420_v6 = vpop.permute.xlu0 %419 }
  0xd5   :  { %v260_v9 = vadd.f32 %v256_v8, %v232_v60 }
  0xd7   :  { %v305_v10 = vpop.permute.xlu1 %304 }
  0xd8   :  { %v318_v28 = vmul.f32 %v315_v13, %v305_v10 }
  0xda   :  { %v322_v54 = vadd.f32 %v318_v28, %v290_v57  ;;  %v373_v57 = vmul.f32 %v371_v37, %v358_v26 }
  0xdb   :  { %v310_v14 = vpop.permute.xlu1 %309 }
  0xdc   :  { %v319_v49 = vmul.f32 %v315_v13, %v310_v14 }
  0xde   :  { %v323_v29 = vadd.f32 %v319_v49, %v291_v7 }
  0xe0   :  { %v266_v15 = vpop.permute.xlu1 %265 }
  0xe1   :  { %v284_v16 = vmul.f32 %v283_v30, %v266_v15  ;;  %v812_v15 = vld [vmem:[%s1088_s5 + $0x18] sm:$0xff]  }
  0xe3   :  { %v288_v19 = vadd.f32 %v284_v16, %v260_v9  ;;  %v681_v16 = vld [vmem:[%s1089_s6 + $0x8] sm:$0xff] }
  0xe5   :  { %v334_v20 = vpop.permute.xlu1 %333  ;;  %v320_v22 = vadd.f32 %v316_v17, %v288_v19  ;;  %v680_v17 = vld [vmem:[%s1089_s6] sm:$0xff]  ;;  %v683_v19 = vld [vmem:[%s1089_s6 + $0x18] sm:$0xff] }
  0xe6   :  { %v346_v35 = vmul.f32 %v343_v33, %v334_v20  ;;  %v682_v20 = vld [vmem:[%s1089_s6 + $0x10] sm:$0xff] }
  0xe8   :  { %v350_v39 = vadd.f32 %v346_v35, %v322_v54 }
  0xe9   :  { %v338_v23 = vpop.permute.xlu1 %337 }
  0xea   :  { %v347_v27 = vmul.f32 %v343_v33, %v338_v23 }
  0xec   :  { %v351_v32 = vadd.f32 %v347_v27, %v323_v29 }
  0xee   :  { %v300_v34 = vpop.permute.xlu1 %299  ;;  %v379_v60 = vadd.f32 %v375_v52, %v351_v32 }
  0xef   :  { %v317_v30 = vmul.f32 %v315_v13, %v300_v34 }
  0xf1   :  { %v321_v51 = vadd.f32 %v317_v30, %v289_v5 }
  0xf3   :  { %v362_v38 = vpop.permute.xlu1 %361 }
  0xf4   :  { %v374_v41 = vmul.f32 %v371_v37, %v362_v38 }
  0xf6   :  { %v378_v42 = vadd.f32 %v374_v41, %v350_v39 }
  0xf8   :  { %v326_v40 = vpop.permute.xlu1 %325  ;;  %v406_v43 = vadd.f32 %v402_v61, %v378_v42  ;;  %v811_v61 = vld [vmem:[%s1088_s5 + $0x8] sm:$0xff]   ;;  %v813_v42 = vld [vmem:[%s1088_s5 + $0x20] sm:$0xff]  }
  0xf9   :  { %v344_v18 = vmul.f32 %v343_v33, %v326_v40 }
  0xfa   :  { %v434_v44 = vadd.f32 %v425_v31, %v406_v43 }
  0xfb   :  { %v348_v62 = vadd.f32 %v344_v18, %v320_v22 }
  0xfc   :  { %v330_v45 = vpop.permute.xlu1 %329  ;;  %440 = vrot.lane.b32.xlu1 %v434_v44, %s816_s28 }
  0xfd   :  { %v345_v48 = vmul.f32 %v343_v33, %v330_v45 }
  0xff   :  { %v349_v53 = vadd.f32 %v345_v48, %v321_v51 }
 0x101   :  { %v394_v25 = vpop.permute.xlu1 %393  ;;  %v377_v0 = vadd.f32 %v373_v57, %v349_v53 }
 0x102   :  { %v403_v55 = vmul.f32 %v399_v36, %v394_v25  ;;  %v814_v25 = vld [vmem:[%s1088_s5 + $0x28] sm:$0xff]  }
 0x104   :  { %v407_v47 = vadd.f32 %v403_v55, %v379_v60 }
 0x106   :  { %v354_v46 = vpop.permute.xlu1 %353 }
 0x107   :  { %v372_v58 = vmul.f32 %v371_v37, %v354_v46 }
 0x109   :  { %v376_v2 = vadd.f32 %v372_v58, %v348_v62 }
 0x10b   :  { %v382_v50 = vpop.permute.xlu1 %381 }
 0x10c   :  { %v400_v63 = vmul.f32 %v399_v36, %v382_v50 }
 0x10e   :  { %v404_v8 = vadd.f32 %v400_v63, %v376_v2 }
 0x10f   :  { %v386_v56 = vpop.permute.xlu1 %385 }
 0x110   :  { %v401_v59 = vmul.f32 %v399_v36, %v386_v56 }
 0x112   :  { %v405_v5 = vadd.f32 %v401_v59, %v377_v0 }
 0x114   :  { %v430_v3 = vpop.permute.xlu1 %429  ;;  %v433_v12 = vadd.f32 %v420_v6, %v405_v5 }
 0x115   :  { %v435_v7 = vadd.f32 %v430_v3, %v407_v47 }
 0x117   :  { %442 = vrot.lane.b32.xlu0 %v435_v7, %s816_s28  ;;  %v466_v9 = vpack.c.bf16 %v435_v7, %v434_v44 }
 0x118   :  { %v415_v10 = vpop.permute.xlu1 %414 }
 0x119   :  { %v432_v14 = vadd.f32 %v415_v10, %v404_v8  ;;  %758 = vmatprep.subr.bf16.mxu1 %v466_v9 }
 0x11a   :  { %759 = vmatpush3.bf16.msra.mxu1 %v466_v9 }
 0x11b   :  { %438 = vrot.lane.b32.xlu0 %v433_v12, %s816_s28  ;;  %436 = vrot.lane.b32.xlu1 %v432_v14, %s816_s28  ;;  %v465_v13 = vpack.c.bf16 %v433_v12, %v432_v14 }
 0x11d   :  { %760 = vmatprep.subr.bf16.mxu1 %v465_v13 }
 0x11e   :  { %761 = vmatpush3.bf16.msra.mxu1 %v465_v13 }
 0x11f   :  { %454 = vrot.lane.b32.xlu0 %v435_v7, %s819_s15  ;;  %452 = vrot.lane.b32.xlu1 %v434_v44, %s819_s15 }
 0x121   :  { %763 = vmatmul.mubr.msk.bf16.vlgmr.msra.gmra.mxu1 %vm483_vm0, %v812_v15 }
 0x123   :  { %450 = vrot.lane.b32.xlu0 %v433_v12, %s819_s15  ;;  %448 = vrot.lane.b32.xlu1 %v432_v14, %s819_s15 }
 0x127   :  { %691 = vperm.xlu0 %807, %v681_v16   ;;  %686 = vperm.xlu1 %808, %v680_v17  }
 0x12b   :  { %701 = vperm.xlu0 %807, %v683_v19   ;;  %696 = vperm.xlu1 %808, %v682_v20  }
 0x16e   :  { %v441_v22 = vpop.permute.xlu1 %440 }
 0x16f   :  { %v446_v24 = vmul.f32 %v946_v21, %v441_v22 }
 0x189   :  { %v443_v23 = vpop.permute.xlu0 %442 }
 0x18a   :  { %v447_v28 = vmul.f32 %v946_v21, %v443_v23 }
 0x18c   :  { %v472_v33 = vpack.c.bf16 %v447_v28, %v446_v24 }
 0x18d   :  { %v439_v34 = vpop.permute.xlu0 %438  ;;  %v437_v35 = vpop.permute.xlu1 %436 }
 0x18e   :  { %v445_v36 = vmul.f32 %v946_v21, %v439_v34  ;;  %v444_v54 = vmul.f32 %v946_v21, %v437_v35  ;;  %750 = vmatprep.subr.bf16.mxu0 %v472_v33 }
 0x18f   :  { %751 = vmatpush3.bf16.msra.mxu0 %v472_v33 }
 0x190   :  { %v471_v37 = vpack.c.bf16 %v445_v36, %v444_v54 }
 0x191   :  { %v455_v26 = vpop.permute.xlu0 %454  ;;  %v453_v38 = vpop.permute.xlu1 %452 }
 0x192   :  { %v459_v39 = vmul.f32 %v1009_v11, %v455_v26  ;;  %v458_v41 = vmul.f32 %v1009_v11, %v453_v38  ;;  %752 = vmatprep.subr.bf16.mxu0 %v471_v37 }
 0x193   :  { %753 = vmatpush3.bf16.msra.mxu0 %v471_v37 }
 0x194   :  { %v610_v21 = vpack.c.bf16 %v459_v39, %v458_v41 }
 0x195   :  { %v451_v31 = vpop.permute.xlu0 %450  ;;  %v449_v40 = vpop.permute.xlu1 %448 }
 0x196   :  { %v457_v43 = vmul.f32 %v1009_v11, %v451_v31  ;;  %v456_v44 = vmul.f32 %v1009_v11, %v449_v40  ;;  %755 = vmatmul.mubr.msk.bf16.vlgmr.msra.gmra.mxu0 %vm483_vm0, %v811_v61  ;;  %766 = vmatprep.subr.bf16.mxu0 %v610_v21 }
 0x197   :  { %767 = vmatpush3.bf16.msra.mxu0 %v610_v21  ;;  %770 = vmatprep.mubr.msk.bf16.mxu0 %vm483_vm0, %v813_v42 }
 0x198   :  { %v609_v45 = vpack.c.bf16 %v457_v43, %v456_v44 }
 0x19a   :  { %768 = vmatprep.subr.bf16.mxu0 %v609_v45 }
 0x19b   :  { %769 = vmatpush3.bf16.msra.mxu0 %v609_v45 }
 0x19e   :  { %771 = vmatmul.mubr.msk.bf16.vlgmr.msra.gmra.mxu0 %vm483_vm0, %v814_v25 }
 0x1a2   :  { %v687_v11 = vpop.permute.xlu1 %686  ;;  %v692_v51 = vpop.permute.xlu0 %691 }
 0x1a6   :  { %v697_v18 = vpop.permute.xlu1 %696  ;;  %v702_v1 = vpop.permute.xlu0 %701 }
 0x1e1   :  { %v764_v46 = vpop.f32.mrf.mxu1 }
 0x1e3   :  { %v589_v30 = vpop.f32.mrf.mxu1 }
 0x1e5   :  { %v765_v48 = vpop.f32.mrf.mxu1 }
 0x1e7   :  { %v592_v56 = vpop.f32.mrf.mxu1 }
 0x256   :  { %v756_v49 = vpop.f32.mrf.mxu0 }
 0x257   :  { %v598_v32 = vadd.f32 %v764_v46, %v756_v49 }
 0x258   :  { %v524_v27 = vpop.f32.mrf.mxu0 }
 0x259   :  { %v590_v53 = vadd.f32 %v589_v30, %v524_v27 }
 0x25a   :  { %v757_v29 = vpop.f32.mrf.mxu0 }
 0x25b   :  { %v601_v58 = vadd.f32 %v765_v48, %v757_v29 }
 0x25c   :  { %v527_v50 = vpop.f32.mrf.mxu0 }
 0x25d   :  { %v593_v63 = vadd.f32 %v592_v56, %v527_v50 }
 0x25e   :  { %v772_v52 = vpop.f32.mrf.mxu0 }
 0x25f   :  { %v678_v55 = vadd.f32 %v772_v52, %v598_v32 }
 0x260   :  { %v661_v57 = vpop.f32.mrf.mxu0 }
 0x261   :  { %v706_v59 = vadd.f32 %v697_v18, %v678_v55  ;;  %v676_v60 = vadd.f32 %v661_v57, %v590_v53 }
 0x262   :  { %v773_v62 = vpop.f32.mrf.mxu0 }
 0x263   :  { %710 = vst [vmem:[%s1090_s7 + $0x10] sm:$0xff] %v706_v59  ;;  %v704_v0 = vadd.f32 %v687_v11, %v676_v60  ;;  %v679_v47 = vadd.f32 %v773_v62, %v601_v58 }
 0x264   :  { %v664_v3 = vpop.f32.mrf.mxu0 }
 0x265   :  { %708 = vst [vmem:[%s1090_s7] sm:$0xff] %v704_v0  ;;  %v707_v4 = vadd.f32 %v702_v1, %v679_v47  ;;  %v677_v2 = vadd.f32 %v664_v3, %v593_v63 }
 0x267   :  { %711 = vst [vmem:[%s1090_s7 + $0x18] sm:$0xff] %v707_v4  ;;  %v705_v5 = vadd.f32 %v692_v51, %v677_v2 }
 0x269   :  { %709 = vst [vmem:[%s1090_s7 + $0x8] sm:$0xff] %v705_v5 }

</bundles_post_ra>
